<compile_context>
chip_gen: v7x
topology: tpu7x:2x2x1
jax: 0.10.0
libtpu: 0.0.40
codegen_flags: <defaults>
</compile_context>

<pallas_src>
import functools

import jax
import jax.numpy as jnp
import numpy as np
from jax import lax
from jax.experimental import pallas as pl
from jax.experimental.pallas import tpu as pltpu

LANES = 128
SUBLANES = 8
CHUNK = SUBLANES * LANES            # 1024 elements = one (8, 128) f32 vreg
DEFAULT_ROWS_PER_BLOCK = 8192       # (8192, 128) f32 = 4 MiB per input block
DEFAULT_NUM_SPLITS = 2              # leading parallel grid axis (v7x dual-TC)


def _moments_kernel(pred_ref, obs_ref, out_ref, *,
                    n_rows, rb, kb, nblocks, full_tiles):
    """Accumulate raw moments [Σp, Σo, Σp², Σo², Σpo] of the current (rb, 128)
    block into this split's resident (1, 5, 8, 128) output block."""
    c = pl.program_id(0)
    k = pl.program_id(1)

    @pl.when(k == 0)
    def _():
        out_ref[...] = jnp.zeros_like(out_ref)

    blk = c * kb + k                  # logical (unclamped) block index
    nsub = rb // SUBLANES

    def accumulate(masked):
        def body(i, carry):
            sp, so, spp, soo, spo = carry
            r0 = pl.multiple_of(i * SUBLANES, SUBLANES)
            p = pred_ref[pl.ds(r0, SUBLANES), :].astype(jnp.float32)
            o = obs_ref[pl.ds(r0, SUBLANES), :].astype(jnp.float32)
            if masked:
                rows_id = (blk * rb + r0
                           + lax.broadcasted_iota(jnp.int32,
                                                  (SUBLANES, LANES), 0))
                valid = rows_id < n_rows
                p = jnp.where(valid, p, 0.0)
                o = jnp.where(valid, o, 0.0)
            return (sp + p, so + o, spp + p * p, soo + o * o, spo + p * o)

        zero = jnp.zeros((SUBLANES, LANES), jnp.float32)
        sp, so, spp, soo, spo = lax.fori_loop(
            0, nsub, body, (zero, zero, zero, zero, zero),
            unroll=min(8, nsub))
        out_ref[0, 0] += sp
        out_ref[0, 1] += so
        out_ref[0, 2] += spp
        out_ref[0, 3] += soo
        out_ref[0, 4] += spo

    if full_tiles:
        # Every block of every split is fully in-bounds: no mask emitted.
        accumulate(False)
    else:
        # Only blocks that extend past the end (the ragged last block, or
        # clamped beyond-the-end blocks of an uneven split) pay the mask.
        block_oob = (blk + 1) * rb > n_rows

        @pl.when(jnp.logical_not(block_oob))
        def _():
            accumulate(False)

        @pl.when(block_oob)
        def _():
            accumulate(True)


def kge_loss_mod(pred, obs, rows_per_block=DEFAULT_ROWS_PER_BLOCK,
                 num_splits=DEFAULT_NUM_SPLITS):
    assert pred.ndim == 1 and pred.shape == obs.shape
    assert rows_per_block % SUBLANES == 0
    n = obs.shape[0]                 # matches torch's `n = obs.shape[0]`

    # Main body: whole (8,128) chunks streamed by the kernel (free reshape).
    # The <1024-element remainder is folded in with plain JAX — no full-array
    # jnp.pad/copy for ragged N.
    n_main = (n // CHUNK) * CHUNK
    rows = n_main // LANES           # multiple of 8

    if n_main < n:
        pt = pred[n_main:].astype(jnp.float32)
        ot = obs[n_main:].astype(jnp.float32)
        tail = jnp.stack([pt.sum(), ot.sum(), (pt * pt).sum(),
                          (ot * ot).sum(), (pt * ot).sum()])
    else:
        tail = jnp.zeros((5,), jnp.float32)

    if rows > 0:
        p2 = pred[:n_main].reshape(rows, LANES)
        o2 = obs[:n_main].reshape(rows, LANES)

        rb = min(rows_per_block, rows)            # multiple of 8
        nblocks = pl.cdiv(rows, rb)
        splits = max(1, min(num_splits, nblocks))
        kb = pl.cdiv(nblocks, splits)
        full_tiles = (rows % rb == 0) and (splits * kb == nblocks)

        kernel = functools.partial(
            _moments_kernel, n_rows=rows, rb=rb, kb=kb, nblocks=nblocks,
            full_tiles=full_tiles)

        # Clamp the logical block index so an uneven split never issues an
        # out-of-bounds DMA; the clamped blocks are fully masked in-kernel.
        in_map = lambda c, k: (jnp.minimum(c * kb + k, nblocks - 1), 0)

        partial_moments = pl.pallas_call(
            kernel,
            out_shape=jax.ShapeDtypeStruct((splits, 5, SUBLANES, LANES),
                                           jnp.float32),
            grid_spec=pltpu.PrefetchScalarGridSpec(
                num_scalar_prefetch=0,
                grid=(splits, kb),
                in_specs=[
                    pl.BlockSpec((rb, LANES), in_map),
                    pl.BlockSpec((rb, LANES), in_map),
                ],
                out_specs=pl.BlockSpec((1, 5, SUBLANES, LANES),
                                       lambda c, k: (c, 0, 0, 0)),
            ),
            compiler_params=pltpu.CompilerParams(
                dimension_semantics=("parallel", "arbitrary"),
                vmem_limit_bytes=32 * 1024 * 1024,
            ),
            cost_estimate=pl.CostEstimate(
                flops=8 * n_main,
                transcendentals=0,
                bytes_accessed=2 * n_main * pred.dtype.itemsize),
        )(p2, o2)
        moments = partial_moments.sum(axis=(0, 2, 3)) + tail
    else:
        moments = tail

    # ---- Finalize (scalar KGE' from raw moments), done in the wrapper so the
    # kernel output stays lane-dense and dual-TC partials combine trivially.
    nf = jnp.float32(n)
    sp, so, spp, soo, spo = (moments[i] for i in range(5))
    mean_p = sp / nf
    mean_o = so / nf
    numerator = spo - sp * so / nf
    denom1 = jnp.maximum(soo - so * so / nf, 0.0)
    denom2 = jnp.maximum(spp - sp * sp / nf, 0.0)
    r = numerator / (jnp.sqrt(denom1) * jnp.sqrt(denom2))
    alpha = jnp.sqrt(denom2 / nf) / jnp.sqrt(denom1 / nf)
    beta = mean_p / mean_o
    kge_mod = jnp.sqrt((r - 1.0) ** 2 + (alpha - 1.0) ** 2 + (beta - 1.0) ** 2)
    # torch returns tensor([-9999]) (int64) when denom2 == 0; emitted here as
    # float32 with the same value/shape.
    # TODO(synk): exact-equality on a cancellation-prone raw-moment quantity
    # may not fire exactly where torch's centered form would, and the int64
    # sentinel dtype is not reproduced.
    return jnp.where(denom2 == 0.0, jnp.float32(-9999.0), kge_mod).reshape(1)


def _kge_ref(pred, obs):
    # Pure-JAX reference mirroring the torch forward (std_pred/std_obs are
    # computed but unused in the torch module, so they are omitted).
    mean_p = jnp.mean(pred)
    mean_o = jnp.mean(obs)
    n = obs.shape[0]
    num = jnp.sum((obs - mean_o) * (pred - mean_p))
    d1 = jnp.sum(jnp.square(obs - mean_o))
    d2 = jnp.sum(jnp.square(pred - mean_p))
    r = num / (jnp.sqrt(d1) * jnp.sqrt(d2))
    alpha = jnp.sqrt(d2 / n) / jnp.sqrt(d1 / n)
    beta = mean_p / mean_o
    kge = jnp.sqrt(
        jnp.square(r - 1.0) + jnp.square(alpha - 1.0) + jnp.square(beta - 1.0))
    return jnp.where(d2 == 0.0, jnp.float32(-9999.0), kge).reshape(1)


if __name__ == "__main__":
    key = jax.random.PRNGKey(0)

    # Case 1: N multiple of 1024 -> single block, no mask, no JAX tail.
    N1 = 4096
    k1, k2 = jax.random.split(key)
    pred1 = jax.random.normal(k1, (N1,), dtype=jnp.float32) + 1.0
    obs1 = 0.5 * jax.random.normal(k2, (N1,), dtype=jnp.float32) + 1.2
    out1 = jax.block_until_ready(kge_loss_mod(pred1, obs1))
    ref1 = jax.block_until_ready(_kge_ref(pred1, obs1))
    np.testing.assert_allclose(np.asarray(out1), np.asarray(ref1),
                               rtol=1e-3, atol=1e-5)

    # Case 2: ragged N with a small block size -> exercises the plain-JAX tail
    # fold, the masked partial last block, the 2-way split with a clamped
    # (fully masked) trailing block, and the multi-block reduction grid.
    N2 = 20000
    k3, k4 = jax.random.split(jax.random.fold_in(key, 1))
    pred2 = jax.random.normal(k3, (N2,), dtype=jnp.float32) + 0.7
    obs2 = 0.8 * jax.random.normal(k4, (N2,), dtype=jnp.float32) + 1.5
    out2 = jax.block_until_ready(kge_loss_mod(pred2, obs2, rows_per_block=64))
    ref2 = jax.block_until_ready(_kge_ref(pred2, obs2))
    np.testing.assert_allclose(np.asarray(out2), np.asarray(ref2),
                               rtol=1e-3, atol=1e-5)

    print("KERNEL_OK")
</pallas_src>

<mosaic_0001>
module attributes {stable_mosaic.version = 11 : i64} {
  func.func @_moments_kernel(%arg0: i32, %arg1: i32, %arg2: memref<32x128xf32, #tpu.memory_space<vmem>>, %arg3: memref<32x128xf32, #tpu.memory_space<vmem>>, %arg4: memref<1x5x8x128xf32, #tpu.memory_space<vmem>>) attributes {dimension_semantics = [#tpu.dimension_semantics<parallel>, #tpu.dimension_semantics<arbitrary>], iteration_bounds = array<i64: 1, 1>, scalar_prefetch = 0 : i64, scratch_operands = 0 : i64, tpu.core_type = #tpu.core_type<tc>, window_params = [{transform_indices = @transform_0, window_bounds = array<i64: 32, 128>}, {transform_indices = @transform_1, window_bounds = array<i64: 32, 128>}, {transform_indices = @transform_2, window_bounds = array<i64: 1, 5, 8, 128>}]} {
    %c0_i32 = arith.constant 0 : i32
    %0 = arith.cmpi eq, %arg1, %c0_i32 : i32
    %1 = arith.extui %0 : i1 to i32
    %c0_i32_0 = arith.constant 0 : i32
    %2 = arith.cmpi ne, %1, %c0_i32_0 : i32
    scf.if %2 {
      %cst_48 = arith.constant 0.000000e+00 : f32
      %90 = vector.broadcast %cst_48 : f32 to vector<1x5x8x128xf32>
      %c0_49 = arith.constant 0 : index
      %c0_50 = arith.constant 0 : index
      %c0_51 = arith.constant 0 : index
      %c0_52 = arith.constant 0 : index
      %91 = vector.load %arg4[%c0_49, %c0_50, %c0_51, %c0_52] : memref<1x5x8x128xf32, #tpu.memory_space<vmem>>, vector<1x5x8x128xf32>
      tpu.vector_store %arg4[%c0_49, %c0_50, %c0_51, %c0_52], %90 {strides = array<i32>} : memref<1x5x8x128xf32, #tpu.memory_space<vmem>>, vector<1x5x8x128xf32>,
    } else {
    }
    %cst = arith.constant 0.000000e+00 : f32
    %3 = vector.broadcast %cst : f32 to vector<8x128xf32>
    %c0_i32_1 = arith.constant 0 : i32
    %c8_i32 = arith.constant 8 : i32
    %4 = arith.muli %c0_i32_1, %c8_i32 : i32
    %5 = tpu.assume_multiple %4, 8 : i32
    %6 = arith.index_cast %5 : i32 to index
    %c0 = arith.constant 0 : index
    %7 = vector.load %arg2[%6, %c0] : memref<32x128xf32, #tpu.memory_space<vmem>>, vector<8x128xf32>
    %8 = arith.index_cast %5 : i32 to index
    %c0_2 = arith.constant 0 : index
    %9 = vector.load %arg3[%8, %c0_2] : memref<32x128xf32, #tpu.memory_space<vmem>>, vector<8x128xf32>
    %10 = arith.addf %3, %7 : vector<8x128xf32>
    %11 = arith.addf %3, %9 : vector<8x128xf32>
    %12 = arith.mulf %7, %7 : vector<8x128xf32>
    %13 = arith.addf %3, %12 : vector<8x128xf32>
    %14 = arith.mulf %9, %9 : vector<8x128xf32>
    %15 = arith.addf %3, %14 : vector<8x128xf32>
    %16 = arith.mulf %7, %9 : vector<8x128xf32>
    %17 = arith.addf %3, %16 : vector<8x128xf32>
    %c1_i32 = arith.constant 1 : i32
    %c8_i32_3 = arith.constant 8 : i32
    %18 = arith.muli %c1_i32, %c8_i32_3 : i32
    %19 = tpu.assume_multiple %18, 8 : i32
    %20 = arith.index_cast %19 : i32 to index
    %c0_4 = arith.constant 0 : index
    %21 = vector.load %arg2[%20, %c0_4] : memref<32x128xf32, #tpu.memory_space<vmem>>, vector<8x128xf32>
    %22 = arith.index_cast %19 : i32 to index
    %c0_5 = arith.constant 0 : index
    %23 = vector.load %arg3[%22, %c0_5] : memref<32x128xf32, #tpu.memory_space<vmem>>, vector<8x128xf32>
    %24 = arith.addf %10, %21 : vector<8x128xf32>
    %25 = arith.addf %11, %23 : vector<8x128xf32>
    %26 = arith.mulf %21, %21 : vector<8x128xf32>
    %27 = arith.addf %13, %26 : vector<8x128xf32>
    %28 = arith.mulf %23, %23 : vector<8x128xf32>
    %29 = arith.addf %15, %28 : vector<8x128xf32>
    %30 = arith.mulf %21, %23 : vector<8x128xf32>
    %31 = arith.addf %17, %30 : vector<8x128xf32>
    %c2_i32 = arith.constant 2 : i32
    %c8_i32_6 = arith.constant 8 : i32
    %32 = arith.muli %c2_i32, %c8_i32_6 : i32
    %33 = tpu.assume_multiple %32, 8 : i32
    %34 = arith.index_cast %33 : i32 to index
    %c0_7 = arith.constant 0 : index
    %35 = vector.load %arg2[%34, %c0_7] : memref<32x128xf32, #tpu.memory_space<vmem>>, vector<8x128xf32>
    %36 = arith.index_cast %33 : i32 to index
    %c0_8 = arith.constant 0 : index
    %37 = vector.load %arg3[%36, %c0_8] : memref<32x128xf32, #tpu.memory_space<vmem>>, vector<8x128xf32>
    %38 = arith.addf %24, %35 : vector<8x128xf32>
    %39 = arith.addf %25, %37 : vector<8x128xf32>
    %40 = arith.mulf %35, %35 : vector<8x128xf32>
    %41 = arith.addf %27, %40 : vector<8x128xf32>
    %42 = arith.mulf %37, %37 : vector<8x128xf32>
    %43 = arith.addf %29, %42 : vector<8x128xf32>
    %44 = arith.mulf %35, %37 : vector<8x128xf32>
    %45 = arith.addf %31, %44 : vector<8x128xf32>
    %c3_i32 = arith.constant 3 : i32
    %c8_i32_9 = arith.constant 8 : i32
    %46 = arith.muli %c3_i32, %c8_i32_9 : i32
    %47 = tpu.assume_multiple %46, 8 : i32
    %48 = arith.index_cast %47 : i32 to index
    %c0_10 = arith.constant 0 : index
    %49 = vector.load %arg2[%48, %c0_10] : memref<32x128xf32, #tpu.memory_space<vmem>>, vector<8x128xf32>
    %50 = arith.index_cast %47 : i32 to index
    %c0_11 = arith.constant 0 : index
    %51 = vector.load %arg3[%50, %c0_11] : memref<32x128xf32, #tpu.memory_space<vmem>>, vector<8x128xf32>
    %52 = arith.addf %38, %49 : vector<8x128xf32>
    %53 = arith.addf %39, %51 : vector<8x128xf32>
    %54 = arith.mulf %49, %49 : vector<8x128xf32>
    %55 = arith.addf %41, %54 : vector<8x128xf32>
    %56 = arith.mulf %51, %51 : vector<8x128xf32>
    %57 = arith.addf %43, %56 : vector<8x128xf32>
    %58 = arith.mulf %49, %51 : vector<8x128xf32>
    %59 = arith.addf %45, %58 : vector<8x128xf32>
    %c4_i32 = arith.constant 4 : i32
    %c0_12 = arith.constant 0 : index
    %c0_13 = arith.constant 0 : index
    %c0_14 = arith.constant 0 : index
    %c0_15 = arith.constant 0 : index
    %60 = vector.load %arg4[%c0_12, %c0_13, %c0_14, %c0_15] : memref<1x5x8x128xf32, #tpu.memory_space<vmem>>, vector<1x1x8x128xf32>
    %61 = vector.shape_cast %60 : vector<1x1x8x128xf32> to vector<8x128xf32>
    %62 = arith.addf %61, %52 : vector<8x128xf32>
    %c0_16 = arith.constant 0 : index
    %c0_17 = arith.constant 0 : index
    %c0_18 = arith.constant 0 : index
    %c0_19 = arith.constant 0 : index
    %63 = vector.load %arg4[%c0_16, %c0_17, %c0_18, %c0_19] : memref<1x5x8x128xf32, #tpu.memory_space<vmem>>, vector<1x1x8x128xf32>
    %64 = vector.shape_cast %63 : vector<1x1x8x128xf32> to vector<8x128xf32>
    %65 = vector.shape_cast %62 : vector<8x128xf32> to vector<1x1x8x128xf32>
    tpu.vector_store %arg4[%c0_16, %c0_17, %c0_18, %c0_19], %65 {strides = array<i32>} : memref<1x5x8x128xf32, #tpu.memory_space<vmem>>, vector<1x1x8x128xf32>,
    %c0_20 = arith.constant 0 : index
    %c1 = arith.constant 1 : index
    %c0_21 = arith.constant 0 : index
    %c0_22 = arith.constant 0 : index
    %66 = vector.load %arg4[%c0_20, %c1, %c0_21, %c0_22] : memref<1x5x8x128xf32, #tpu.memory_space<vmem>>, vector<1x1x8x128xf32>
    %67 = vector.shape_cast %66 : vector<1x1x8x128xf32> to vector<8x128xf32>
    %68 = arith.addf %67, %53 : vector<8x128xf32>
    %c0_23 = arith.constant 0 : index
    %c1_24 = arith.constant 1 : index
    %c0_25 = arith.constant 0 : index
    %c0_26 = arith.constant 0 : index
    %69 = vector.load %arg4[%c0_23, %c1_24, %c0_25, %c0_26] : memref<1x5x8x128xf32, #tpu.memory_space<vmem>>, vector<1x1x8x128xf32>
    %70 = vector.shape_cast %69 : vector<1x1x8x128xf32> to vector<8x128xf32>
    %71 = vector.shape_cast %68 : vector<8x128xf32> to vector<1x1x8x128xf32>
    tpu.vector_store %arg4[%c0_23, %c1_24, %c0_25, %c0_26], %71 {strides = array<i32>} : memref<1x5x8x128xf32, #tpu.memory_space<vmem>>, vector<1x1x8x128xf32>,
    %c0_27 = arith.constant 0 : index
    %c2 = arith.constant 2 : index
    %c0_28 = arith.constant 0 : index
    %c0_29 = arith.constant 0 : index
    %72 = vector.load %arg4[%c0_27, %c2, %c0_28, %c0_29] : memref<1x5x8x128xf32, #tpu.memory_space<vmem>>, vector<1x1x8x128xf32>
    %73 = vector.shape_cast %72 : vector<1x1x8x128xf32> to vector<8x128xf32>
    %74 = arith.addf %73, %55 : vector<8x128xf32>
    %c0_30 = arith.constant 0 : index
    %c2_31 = arith.constant 2 : index
    %c0_32 = arith.constant 0 : index
    %c0_33 = arith.constant 0 : index
    %75 = vector.load %arg4[%c0_30, %c2_31, %c0_32, %c0_33] : memref<1x5x8x128xf32, #tpu.memory_space<vmem>>, vector<1x1x8x128xf32>
    %76 = vector.shape_cast %75 : vector<1x1x8x128xf32> to vector<8x128xf32>
    %77 = vector.shape_cast %74 : vector<8x128xf32> to vector<1x1x8x128xf32>
    tpu.vector_store %arg4[%c0_30, %c2_31, %c0_32, %c0_33], %77 {strides = array<i32>} : memref<1x5x8x128xf32, #tpu.memory_space<vmem>>, vector<1x1x8x128xf32>,
    %c0_34 = arith.constant 0 : index
    %c3 = arith.constant 3 : index
    %c0_35 = arith.constant 0 : index
    %c0_36 = arith.constant 0 : index
    %78 = vector.load %arg4[%c0_34, %c3, %c0_35, %c0_36] : memref<1x5x8x128xf32, #tpu.memory_space<vmem>>, vector<1x1x8x128xf32>
    %79 = vector.shape_cast %78 : vector<1x1x8x128xf32> to vector<8x128xf32>
    %80 = arith.addf %79, %57 : vector<8x128xf32>
    %c0_37 = arith.constant 0 : index
    %c3_38 = arith.constant 3 : index
    %c0_39 = arith.constant 0 : index
    %c0_40 = arith.constant 0 : index
    %81 = vector.load %arg4[%c0_37, %c3_38, %c0_39, %c0_40] : memref<1x5x8x128xf32, #tpu.memory_space<vmem>>, vector<1x1x8x128xf32>
    %82 = vector.shape_cast %81 : vector<1x1x8x128xf32> to vector<8x128xf32>
    %83 = vector.shape_cast %80 : vector<8x128xf32> to vector<1x1x8x128xf32>
    tpu.vector_store %arg4[%c0_37, %c3_38, %c0_39, %c0_40], %83 {strides = array<i32>} : memref<1x5x8x128xf32, #tpu.memory_space<vmem>>, vector<1x1x8x128xf32>,
    %c0_41 = arith.constant 0 : index
    %c4 = arith.constant 4 : index
    %c0_42 = arith.constant 0 : index
    %c0_43 = arith.constant 0 : index
    %84 = vector.load %arg4[%c0_41, %c4, %c0_42, %c0_43] : memref<1x5x8x128xf32, #tpu.memory_space<vmem>>, vector<1x1x8x128xf32>
    %85 = vector.shape_cast %84 : vector<1x1x8x128xf32> to vector<8x128xf32>
    %86 = arith.addf %85, %59 : vector<8x128xf32>
    %c0_44 = arith.constant 0 : index
    %c4_45 = arith.constant 4 : index
    %c0_46 = arith.constant 0 : index
    %c0_47 = arith.constant 0 : index
    %87 = vector.load %arg4[%c0_44, %c4_45, %c0_46, %c0_47] : memref<1x5x8x128xf32, #tpu.memory_space<vmem>>, vector<1x1x8x128xf32>
    %88 = vector.shape_cast %87 : vector<1x1x8x128xf32> to vector<8x128xf32>
    %89 = vector.shape_cast %86 : vector<8x128xf32> to vector<1x1x8x128xf32>
    tpu.vector_store %arg4[%c0_44, %c4_45, %c0_46, %c0_47], %89 {strides = array<i32>} : memref<1x5x8x128xf32, #tpu.memory_space<vmem>>, vector<1x1x8x128xf32>,
    return
  }
  func.func @transform_0(%arg0: i32, %arg1: i32) -> (i32, i32) {
    %c1_i32 = arith.constant 1 : i32
    %0 = arith.muli %arg0, %c1_i32 : i32
    %1 = arith.addi %0, %arg1 : i32
    %c0_i32 = arith.constant 0 : i32
    %2 = arith.minsi %1, %c0_i32 : i32
    %c0_i32_0 = arith.constant 0 : i32
    %c0_i32_1 = arith.constant 0 : i32
    return %2, %c0_i32_0 : i32, i32
  }
  func.func @transform_1(%arg0: i32, %arg1: i32) -> (i32, i32) {
    %c1_i32 = arith.constant 1 : i32
    %0 = arith.muli %arg0, %c1_i32 : i32
    %1 = arith.addi %0, %arg1 : i32
    %c0_i32 = arith.constant 0 : i32
    %2 = arith.minsi %1, %c0_i32 : i32
    %c0_i32_0 = arith.constant 0 : i32
    %c0_i32_1 = arith.constant 0 : i32
    return %2, %c0_i32_0 : i32, i32
  }
  func.func @transform_2(%arg0: i32, %arg1: i32) -> (i32, i32, i32, i32) {
    %c0_i32 = arith.constant 0 : i32
    %c0_i32_0 = arith.constant 0 : i32
    %c0_i32_1 = arith.constant 0 : i32
    %c0_i32_2 = arith.constant 0 : i32
    return %arg0, %c0_i32, %c0_i32_0, %c0_i32_1 : i32, i32, i32, i32
  }
}

</mosaic_0001>

<bundles_post_ra>
// kernel: tpu_custom_call.1
= control target key start
LH: loop header
LB: loop body
LE: loop exit
PB: predicated region body
PF: predicated region fallthrough
CT: control target
= control target key end

     0   :  { %7 = vsyncpa [#allocation3], 0  ;;  %s299_s0 = inlined_call_operand.hbm [shape: f32[32,128], index: 0, kind: input, shape index: {}]   ;;  %s300_s1 = inlined_call_operand.hbm [shape: f32[32,128], index: 1, kind: input, shape index: {}]   ;;  %s301_s2 = inlined_call_operand.hbm [shape: f32[1,5,8,128], index: 2, kind: output, shape index: {}]  }
   0x1   :  { %8 = vsyncpa [#allocation6], 0 }
   0x2   :  { %9 = vsyncpa [#allocation4], 0  ;;  %s234_s9 = smov [#allocation2]   ;;  %s162_s13 = scalar_lea.hbm %s299_s0, 512 }
   0x3   :  { %s21_s10 = sshll.u32 %s234_s9, 4  ;;  %p163_p0 = scmp.ne.s32.totalorder %s299_s0, %s162_s13  ;;  %s22_s10 = int_to_ptr.vmem [resolvable:$true] %s21_s10 }
   0x4   :  { %p166_p1 = scmp.lt.u32.totalorder %s162_s13, %s299_s0 }
   0x6   :  { %p168_p2 = pnand %p166_p1, %p163_p0 }
   0x8   :  { %171 = shalt.err (!%p168_p2)
}
   0x9   :  { %s172_s18 = scalar_lea.vmem %s22_s10, 512  ;;  %p177_p4 = scmp.lt.s32.totalorder %s22_s10, %s22_s10 }
   0xa   :  { %p173_p3 = scmp.ne.s32.totalorder %s22_s10, %s172_s18  ;;  %p178_p5 = scmp.lt.s32.totalorder %s172_s18, %s172_s18 }
   0xc   :  { %p179_p6 = por %p178_p5, %p177_p4 }
   0xe   :  { %p180_p7 = pnand %p179_p6, %p173_p3 }
  0x10   :  { %183 = shalt.err (!%p180_p7)
}
  0x11   :  { %s235_s19 = smov 128   ;;  %s236_s20 = smov 8  }
  0x12   :  { %27 = dma.hbm_to_vmem [thread:$0]  %s299_s0, 512, %s22_s10, [#allocation3], %s235_s19, %s235_s19, %s236_s20  }
  0x13   :  { %s237_s23 = smov [#allocation5]   ;;  %s184_s27 = scalar_lea.hbm %s300_s1, 512 }
  0x14   :  { %s39_s24 = sshll.u32 %s237_s23, 4  ;;  %p185_p8 = scmp.ne.s32.totalorder %s300_s1, %s184_s27  ;;  %s40_s24 = int_to_ptr.vmem [resolvable:$true] %s39_s24 }
  0x15   :  { %p188_p9 = scmp.lt.u32.totalorder %s184_s27, %s300_s1 }
  0x17   :  { %p190_p10 = pnand %p188_p9, %p185_p8 }
  0x19   :  { %193 = shalt.err (!%p190_p10)
}
  0x1a   :  { %s194_s4 = scalar_lea.vmem %s40_s24, 512  ;;  %p199_p12 = scmp.lt.s32.totalorder %s40_s24, %s40_s24 }
  0x1b   :  { %p195_p11 = scmp.ne.s32.totalorder %s40_s24, %s194_s4  ;;  %p200_p13 = scmp.lt.s32.totalorder %s194_s4, %s194_s4 }
  0x1d   :  { %p201_p0 = por %p200_p13, %p199_p12 }
  0x1f   :  { %p202_p1 = pnand %p201_p0, %p195_p11 }
  0x21   :  { %205 = shalt.err (!%p202_p1)
}
  0x22   :  { %45 = dma.hbm_to_vmem [thread:$0]  %s300_s1, 512, %s40_s24, [#allocation6], %s235_s19, %s235_s19, %s236_s20  }
  0x23   :  { %228 = dma.done.wait [#allocation3], 512  }
  0x24   :  { %229 = vsyncadd [#allocation3], 4294966784 }
  0x25   :  { %230 = dma.done.wait [#allocation6], 512  }
  0x26   :  { %231 = vsyncadd [#allocation6], 4294966784  ;;  %v69_v0 = vld [vmem:[#allocation2] sm:$0xff]  ;;  %v80_v1 = vld [vmem:[#allocation2 + $0x8] sm:$0xff]  ;;  %s238_s1 = smov [#allocation7]  }
  0x27   :  { %v92_v2 = vld [vmem:[#allocation2 + $0x10] sm:$0xff]  ;;  %v83_v3 = vadd.f32 %v80_v1, %v69_v0  ;;  %v104_v4 = vld [vmem:[#allocation2 + $0x18] sm:$0xff]  ;;  %v70_v5 = vld [vmem:[#allocation5] sm:$0xff]  ;;  %v73_v7 = vmul.f32 %v69_v0, %v69_v0  ;;  %v85_v8 = vmul.f32 %v80_v1, %v80_v1  ;;  %s139_s6 = sshll.u32 %s238_s1, 4  ;;  %s140_s6 = int_to_ptr.vmem [resolvable:$true] %s139_s6 }
  0x28   :  { %v82_v6 = vld [vmem:[#allocation5 + $0x8] sm:$0xff]  ;;  %v97_v9 = vmul.f32 %v92_v2, %v92_v2  ;;  %v94_v11 = vld [vmem:[#allocation5 + $0x10] sm:$0xff]  ;;  %v106_v12 = vld [vmem:[#allocation5 + $0x18] sm:$0xff]  ;;  %v109_v13 = vmul.f32 %v104_v4, %v104_v4  ;;  %v75_v14 = vmul.f32 %v70_v5, %v70_v5  ;;  %v77_v22 = vmul.f32 %v70_v5, %v69_v0  ;;  %s206_s7 = scalar_lea.vmem %s140_s6, 640  ;;  %p211_p3 = scmp.lt.s32.totalorder %s140_s6, %s140_s6 }
  0x29   :  { %v84_v10 = vadd.f32 %v82_v6, %v70_v5  ;;  %v87_v15 = vmul.f32 %v82_v6, %v82_v6  ;;  %v95_v16 = vadd.f32 %v92_v2, %v83_v3  ;;  %v86_v17 = vadd.f32 %v85_v8, %v73_v7  ;;  %p207_p2 = scmp.ne.s32.totalorder %s140_s6, %s206_s7  ;;  %p212_p4 = scmp.lt.s32.totalorder %s206_s7, %s206_s7 }
  0x2a   :  { %v99_v18 = vmul.f32 %v94_v11, %v94_v11  ;;  %v111_v19 = vmul.f32 %v106_v12, %v106_v12  ;;  %v89_v23 = vmul.f32 %v82_v6, %v80_v1  ;;  %v101_v26 = vmul.f32 %v94_v11, %v92_v2 }
  0x2b   :  { %v96_v20 = vadd.f32 %v94_v11, %v84_v10  ;;  %v88_v21 = vadd.f32 %v87_v15, %v75_v14  ;;  %v107_v24 = vadd.f32 %v104_v4, %v95_v16  ;;  %v98_v25 = vadd.f32 %v97_v9, %v86_v17  ;;  %p213_p5 = por %p212_p4, %p211_p3 }
  0x2c   :  { %v90_v29 = vadd.f32 %v89_v23, %v77_v22  ;;  %v113_v30 = vmul.f32 %v106_v12, %v104_v4 }
  0x2d   :  { %v108_v27 = vadd.f32 %v106_v12, %v96_v20  ;;  %v100_v28 = vadd.f32 %v99_v18, %v88_v21  ;;  %v110_v31 = vadd.f32 %v109_v13, %v98_v25  ;;  %117 = vst [vmem:[#allocation7] sm:$0xff] %v107_v24  ;;  %p214_p6 = pnand %p213_p5, %p207_p2 }
  0x2e   :  { %v102_v33 = vadd.f32 %v101_v26, %v90_v29 }
  0x2f   :  { %v112_v32 = vadd.f32 %v111_v19, %v100_v28  ;;  %121 = vst [vmem:[#allocation7 + $0x8] sm:$0xff] %v108_v27  ;;  %125 = vst [vmem:[#allocation7 + $0x10] sm:$0xff] %v110_v31 }
  0x30   :  { %v114_v34 = vadd.f32 %v113_v30, %v102_v33 }
  0x31   :  { %129 = vst [vmem:[#allocation7 + $0x18] sm:$0xff] %v112_v32 }
  0x32   :  { %133 = vst [vmem:[#allocation7 + $0x20] sm:$0xff] %v114_v34 }
  0x33   :  { %217 = shalt.err (!%p214_p6)
}
  0x34   :  { %s218_s10 = scalar_lea.hbm %s301_s2, 640 }
  0x35   :  { %p219_p7 = scmp.ne.s32.totalorder %s301_s2, %s218_s10  ;;  %p222_p8 = scmp.lt.u32.totalorder %s218_s10, %s301_s2 }
  0x37   :  { %p224_p9 = pnand %p222_p8, %p219_p7 }
  0x39   :  { %227 = shalt.err (!%p224_p9)
}
  0x3a   :  { %145 = dma.vmem_to_hbm [thread:$0]  %s140_s6, 640, %s301_s2, [#allocation4], %s235_s19, %s235_s19, %s236_s20  }
  0x3b   :  { %232 = dma.done.wait [#allocation4], 640  }
  0x3c   :  { %233 = vsyncadd [#allocation4], 4294966656 }
  0x3d   :  { %149 = vsyncpa [#allocation3], 1 }
  0x3e   :  { %150 = vsyncpa [#allocation6], 1 }
  0x3f   :  { %151 = vsyncpa [#allocation4], 1 }

</bundles_post_ra>
